<compile_context>
chip_gen: v7x
topology: tpu7x:2x2x1
jax: 0.10.0
libtpu: 0.0.40
codegen_flags: <defaults>
</compile_context>

<pallas_src>
import jax
import jax.numpy as jnp
from jax.experimental import pallas as pl
from jax.experimental.pallas import tpu as pltpu

ACT_DIM = 8          # act_dim for the synthetic test
NEG_SLOPE = 0.01     # PyTorch F.leaky_relu default negative_slope
OBS_DIM = 3 + 256    # eef_pose(3) + obj_emb(256)
MAX_TB = 512         # cap on rows per grid step

BF16 = jnp.bfloat16
F32 = jnp.float32


def bc_policy_kernel(x_ref, w_in_ref, w_mid_ref, w_fc1_ref, w_tail_ref, b_ref,
                     out_ref):
    xb = x_ref[...].astype(BF16)          # (TB, 259) bf16, raw obs column order
    b = b_ref[...]                        # (8, 256) f32 packed biases

    def dot(a, w):
        return jnp.dot(a, w, preferred_element_type=F32)

    def lrelu(v):                         # one VPU max instead of cmp+select
        return jnp.maximum(v, NEG_SLOPE * v)

    # layer 1: block-diag(eef_fc1, obj_fc1): (TB,259)@(259,256) -> [eef1|obj1]
    h = lrelu(dot(xb, w_in_ref[...]) + b[0:1, :]).astype(BF16)
    # layer 2: block-diag(eef_fc2, obj_fc2): (TB,256)@(256,256) -> [eef2|obj2]
    h = lrelu(dot(h, w_mid_ref[...]) + b[1:2, :]).astype(BF16)
    # fc1: cat(eef,obj) @ W1 as a single (TB,256)@(256,128) dot
    h = lrelu(dot(h, w_fc1_ref[...]) + b[2:3, :128]).astype(BF16)
    # fc2 (output zero-padded 64 -> 128 lanes, exact)
    h = lrelu(dot(h, w_tail_ref[0]) + b[3:4, :128]).astype(BF16)
    # fc3 (no activation; output zero-padded act_dim -> 128 lanes), bf16 store
    out_ref[...] = (dot(h, w_tail_ref[1]) + b[4:5, :128]).astype(BF16)


def init_params(key, act_dim=ACT_DIM):
    """Deterministic PyTorch-style init: U(-1/sqrt(fan_in), 1/sqrt(fan_in))."""
    def linear(k, fan_in, fan_out):
        kw, kb = jax.random.split(k)
        bound = 1.0 / float(fan_in) ** 0.5
        w = jax.random.uniform(kw, (fan_in, fan_out), F32, -bound, bound)
        b = jax.random.uniform(kb, (fan_out,), F32, -bound, bound)
        return w, b

    keys = jax.random.split(key, 7)
    w_o1, b_o1 = linear(keys[0], 256, 128)     # obj_fc1
    w_o2, b_o2 = linear(keys[1], 128, 128)     # obj_fc2
    w_e1, b_e1 = linear(keys[2], 3, 128)       # eef_fc1
    w_e2, b_e2 = linear(keys[3], 128, 128)     # eef_fc2
    w1,  b1    = linear(keys[4], 256, 128)     # fc1
    w2,  b2    = linear(keys[5], 128, 64)      # fc2
    w3,  b3    = linear(keys[6], 64, act_dim)  # fc3

    # Block-diagonal layer-1 weight in raw obs column order:
    #   rows 0:3  -> eef_fc1 (output lanes 0:128)
    #   rows 3:259 -> obj_fc1 (output lanes 128:256)
    w_in = jnp.zeros((OBS_DIM, 256), F32)
    w_in = w_in.at[:3, :128].set(w_e1)
    w_in = w_in.at[3:, 128:].set(w_o1)

    # Block-diagonal layer-2 weight: [eef1|obj1] -> [eef2|obj2]
    w_mid = jnp.zeros((256, 256), F32)
    w_mid = w_mid.at[:128, :128].set(w_e2)
    w_mid = w_mid.at[128:, 128:].set(w_o2)

    # fc2 / fc3 zero-padded to 128 output lanes (exact: pads contribute 0,
    # leaky_relu(0) = 0, and w3 pad rows are zero).
    w2_pad = jnp.zeros((128, 128), F32).at[:, :64].set(w2)
    w3_pad = jnp.zeros((128, 128), F32).at[:64, :act_dim].set(w3)
    w_tail = jnp.stack([w2_pad, w3_pad])

    # Packed f32 biases: one (8, 256) block.
    b_pack = jnp.zeros((8, 256), F32)
    b_pack = b_pack.at[0, :128].set(b_e1).at[0, 128:].set(b_o1)
    b_pack = b_pack.at[1, :128].set(b_e2).at[1, 128:].set(b_o2)
    b_pack = b_pack.at[2, :128].set(b1)
    b_pack = b_pack.at[3, :64].set(b2)
    b_pack = b_pack.at[4, :act_dim].set(b3)

    return dict(
        act_dim=act_dim,
        # kernel operands (bf16 weights, f32 biases)
        w_in=w_in.astype(BF16), w_mid=w_mid.astype(BF16),
        w_fc1=w1.astype(BF16), w_tail=w_tail.astype(BF16),
        b_pack=b_pack,
        # raw f32 params for the pure-JAX reference
        w_o1=w_o1, b_o1=b_o1, w_o2=w_o2, b_o2=b_o2,
        w_e1=w_e1, b_e1=b_e1, w_e2=w_e2, b_e2=b_e2,
        w1=w1, b1=b1, w2=w2, b2=b2, w3=w3, b3=b3,
    )


def _pick_tb(batch):
    """Batch-tile rows: tiny batches stay tiny; large batches get <=512-row
    tiles while keeping >=2 'parallel' grid steps (v7x has 2 TensorCores)."""
    ru8 = lambda n: ((n + 7) // 8) * 8
    if batch <= 16:
        return max(8, ru8(batch))
    return max(8, min(MAX_TB, ru8((batch + 1) // 2)))


def bc_policy_pc(obs, params):
    """obs: (B, 259) float32. Returns (B, act_dim) float32."""
    B, obs_dim = obs.shape
    act_dim = params["act_dim"]
    tb = _pick_tb(B)
    grid = ((B + tb - 1) // tb,)

    out = pl.pallas_call(
        bc_policy_kernel,
        out_shape=jax.ShapeDtypeStruct((B, 128), BF16),
        grid_spec=pltpu.PrefetchScalarGridSpec(
            num_scalar_prefetch=0,
            grid=grid,
            in_specs=[
                pl.BlockSpec((tb, obs_dim), lambda i: (i, 0)),       # raw obs
                pl.BlockSpec((obs_dim, 256), lambda i: (0, 0)),      # blockdiag L1
                pl.BlockSpec((256, 256), lambda i: (0, 0)),          # blockdiag L2
                pl.BlockSpec((256, 128), lambda i: (0, 0)),          # fc1
                pl.BlockSpec((2, 128, 128), lambda i: (0, 0, 0)),    # fc2/fc3 pad
                pl.BlockSpec((8, 256), lambda i: (0, 0)),            # biases (f32)
            ],
            out_specs=pl.BlockSpec((tb, 128), lambda i: (i, 0)),
        ),
        compiler_params=pltpu.CompilerParams(
            dimension_semantics=("parallel",)),
    )(obs.astype(F32), params["w_in"], params["w_mid"], params["w_fc1"],
      params["w_tail"], params["b_pack"])

    return out[:, :act_dim].astype(F32)


def bc_policy_pc_ref(obs, params):
    """Pure-JAX f32 reference mirroring the PyTorch module exactly."""
    p = params
    lrelu = lambda v: jnp.where(v > 0, v, NEG_SLOPE * v)
    eef_pose = obs[:, 0:3]
    obj_emb = obs[:, 3:]
    obj = lrelu(obj_emb @ p["w_o1"] + p["b_o1"])
    obj = lrelu(obj @ p["w_o2"] + p["b_o2"])
    eef = lrelu(eef_pose @ p["w_e1"] + p["b_e1"])
    eef = lrelu(eef @ p["w_e2"] + p["b_e2"])
    x = jnp.concatenate((eef, obj), axis=-1)
    x = lrelu(x @ p["w1"] + p["b1"])
    x = lrelu(x @ p["w2"] + p["b2"])
    return x @ p["w3"] + p["b3"]


if __name__ == "__main__":
    key = jax.random.PRNGKey(0)
    k_obs, k_params = jax.random.split(key)

    B = 8
    obs = jax.random.normal(k_obs, (B, OBS_DIM), F32)
    params = init_params(k_params, ACT_DIM)

    out = jax.block_until_ready(bc_policy_pc(obs, params))
    ref = bc_policy_pc_ref(obs, params)

    assert out.shape == (B, ACT_DIM)
    max_err = float(jnp.max(jnp.abs(out - ref)))
    # bf16 MXU operands / bf16 output vs f32 reference -> loosened tolerance.
    assert jnp.allclose(out, ref, atol=5e-2, rtol=5e-2), f"max abs err {max_err}"
    print("KERNEL_OK")
</pallas_src>

<mosaic_0001>
module attributes {stable_mosaic.version = 11 : i64} {
  func.func @bc_policy_kernel(%arg0: i32, %arg1: memref<8x259xf32, #tpu.memory_space<vmem>>, %arg2: memref<259x256xbf16, #tpu.memory_space<vmem>>, %arg3: memref<256x256xbf16, #tpu.memory_space<vmem>>, %arg4: memref<256x128xbf16, #tpu.memory_space<vmem>>, %arg5: memref<2x128x128xbf16, #tpu.memory_space<vmem>>, %arg6: memref<8x256xf32, #tpu.memory_space<vmem>>, %arg7: memref<8x128xbf16, #tpu.memory_space<vmem>>) attributes {dimension_semantics = [#tpu.dimension_semantics<parallel>], iteration_bounds = array<i64: 1>, scalar_prefetch = 0 : i64, scratch_operands = 0 : i64, tpu.core_type = #tpu.core_type<tc>, window_params = [{transform_indices = @transform_0, window_bounds = array<i64: 8, 259>}, {pipeline_mode = #tpu.pipeline_mode<synchronous>, transform_indices = @transform_1, window_bounds = array<i64: 259, 256>}, {pipeline_mode = #tpu.pipeline_mode<synchronous>, transform_indices = @transform_2, window_bounds = array<i64: 256, 256>}, {pipeline_mode = #tpu.pipeline_mode<synchronous>, transform_indices = @transform_3, window_bounds = array<i64: 256, 128>}, {pipeline_mode = #tpu.pipeline_mode<synchronous>, transform_indices = @transform_4, window_bounds = array<i64: 2, 128, 128>}, {pipeline_mode = #tpu.pipeline_mode<synchronous>, transform_indices = @transform_5, window_bounds = array<i64: 8, 256>}, {transform_indices = @transform_6, window_bounds = array<i64: 8, 128>}]} {
    %c0 = arith.constant 0 : index
    %c0_0 = arith.constant 0 : index
    %0 = vector.load %arg1[%c0, %c0_0] : memref<8x259xf32, #tpu.memory_space<vmem>>, vector<8x259xf32>
    %1 = arith.truncf %0 : vector<8x259xf32> to vector<8x259xbf16>
    %c0_1 = arith.constant 0 : index
    %c0_2 = arith.constant 0 : index
    %2 = vector.load %arg6[%c0_1, %c0_2] : memref<8x256xf32, #tpu.memory_space<vmem>>, vector<8x256xf32>
    %c0_3 = arith.constant 0 : index
    %c0_4 = arith.constant 0 : index
    %3 = vector.load %arg2[%c0_3, %c0_4] : memref<259x256xbf16, #tpu.memory_space<vmem>>, vector<259x256xbf16>
    %cst = arith.constant dense<0.000000e+00> : vector<8x256xf32>
    %4 = tpu.matmul %1, %3, %cst {dimension_numbers = #tpu.dot_dimension_numbers<[1], [0], [0], [1], [0, 0, 1, 1], [], []>} : vector<8x259xbf16>, vector<259x256xbf16>, vector<8x256xf32> -> vector<8x256xf32>
    %5 = vector.extract_strided_slice %2 {offsets = [0, 0], sizes = [1, 256], strides = [1, 1]} : vector<8x256xf32> to vector<1x256xf32>
    %6 = vector.broadcast %5 : vector<1x256xf32> to vector<8x256xf32>
    %7 = arith.addf %4, %6 : vector<8x256xf32>
    %cst_5 = arith.constant 0.00999999977 : f32
    %8 = vector.broadcast %cst_5 : f32 to vector<8x256xf32>
    %9 = arith.mulf %8, %7 : vector<8x256xf32>
    %10 = arith.maximumf %7, %9 : vector<8x256xf32>
    %11 = arith.truncf %10 : vector<8x256xf32> to vector<8x256xbf16>
    %c0_6 = arith.constant 0 : index
    %c0_7 = arith.constant 0 : index
    %12 = vector.load %arg3[%c0_6, %c0_7] : memref<256x256xbf16, #tpu.memory_space<vmem>>, vector<256x256xbf16>
    %cst_8 = arith.constant dense<0.000000e+00> : vector<8x256xf32>
    %13 = tpu.matmul %11, %12, %cst_8 {dimension_numbers = #tpu.dot_dimension_numbers<[1], [0], [0], [1], [0, 0, 1, 1], [], []>} : vector<8x256xbf16>, vector<256x256xbf16>, vector<8x256xf32> -> vector<8x256xf32>
    %14 = vector.extract_strided_slice %2 {offsets = [1, 0], sizes = [1, 256], strides = [1, 1]} : vector<8x256xf32> to vector<1x256xf32>
    %15 = vector.broadcast %14 : vector<1x256xf32> to vector<8x256xf32>
    %16 = arith.addf %13, %15 : vector<8x256xf32>
    %cst_9 = arith.constant 0.00999999977 : f32
    %17 = vector.broadcast %cst_9 : f32 to vector<8x256xf32>
    %18 = arith.mulf %17, %16 : vector<8x256xf32>
    %19 = arith.maximumf %16, %18 : vector<8x256xf32>
    %20 = arith.truncf %19 : vector<8x256xf32> to vector<8x256xbf16>
    %c0_10 = arith.constant 0 : index
    %c0_11 = arith.constant 0 : index
    %21 = vector.load %arg4[%c0_10, %c0_11] : memref<256x128xbf16, #tpu.memory_space<vmem>>, vector<256x128xbf16>
    %cst_12 = arith.constant dense<0.000000e+00> : vector<8x128xf32>
    %22 = tpu.matmul %20, %21, %cst_12 {dimension_numbers = #tpu.dot_dimension_numbers<[1], [0], [0], [1], [0, 0, 1, 1], [], []>} : vector<8x256xbf16>, vector<256x128xbf16>, vector<8x128xf32> -> vector<8x128xf32>
    %23 = vector.extract_strided_slice %2 {offsets = [2, 0], sizes = [1, 128], strides = [1, 1]} : vector<8x256xf32> to vector<1x128xf32>
    %24 = vector.broadcast %23 : vector<1x128xf32> to vector<8x128xf32>
    %25 = arith.addf %22, %24 : vector<8x128xf32>
    %cst_13 = arith.constant 0.00999999977 : f32
    %26 = vector.broadcast %cst_13 : f32 to vector<8x128xf32>
    %27 = arith.mulf %26, %25 : vector<8x128xf32>
    %28 = arith.maximumf %25, %27 : vector<8x128xf32>
    %29 = arith.truncf %28 : vector<8x128xf32> to vector<8x128xbf16>
    %c0_14 = arith.constant 0 : index
    %c0_15 = arith.constant 0 : index
    %c0_16 = arith.constant 0 : index
    %30 = vector.load %arg5[%c0_14, %c0_15, %c0_16] : memref<2x128x128xbf16, #tpu.memory_space<vmem>>, vector<1x128x128xbf16>
    %31 = vector.shape_cast %30 : vector<1x128x128xbf16> to vector<128x128xbf16>
    %cst_17 = arith.constant dense<0.000000e+00> : vector<8x128xf32>
    %32 = tpu.matmul %29, %31, %cst_17 {dimension_numbers = #tpu.dot_dimension_numbers<[1], [0], [0], [1], [0, 0, 1, 1], [], []>} : vector<8x128xbf16>, vector<128x128xbf16>, vector<8x128xf32> -> vector<8x128xf32>
    %33 = vector.extract_strided_slice %2 {offsets = [3, 0], sizes = [1, 128], strides = [1, 1]} : vector<8x256xf32> to vector<1x128xf32>
    %34 = vector.broadcast %33 : vector<1x128xf32> to vector<8x128xf32>
    %35 = arith.addf %32, %34 : vector<8x128xf32>
    %cst_18 = arith.constant 0.00999999977 : f32
    %36 = vector.broadcast %cst_18 : f32 to vector<8x128xf32>
    %37 = arith.mulf %36, %35 : vector<8x128xf32>
    %38 = arith.maximumf %35, %37 : vector<8x128xf32>
    %39 = arith.truncf %38 : vector<8x128xf32> to vector<8x128xbf16>
    %c1 = arith.constant 1 : index
    %c0_19 = arith.constant 0 : index
    %c0_20 = arith.constant 0 : index
    %40 = vector.load %arg5[%c1, %c0_19, %c0_20] : memref<2x128x128xbf16, #tpu.memory_space<vmem>>, vector<1x128x128xbf16>
    %41 = vector.shape_cast %40 : vector<1x128x128xbf16> to vector<128x128xbf16>
    %cst_21 = arith.constant dense<0.000000e+00> : vector<8x128xf32>
    %42 = tpu.matmul %39, %41, %cst_21 {dimension_numbers = #tpu.dot_dimension_numbers<[1], [0], [0], [1], [0, 0, 1, 1], [], []>} : vector<8x128xbf16>, vector<128x128xbf16>, vector<8x128xf32> -> vector<8x128xf32>
    %43 = vector.extract_strided_slice %2 {offsets = [4, 0], sizes = [1, 128], strides = [1, 1]} : vector<8x256xf32> to vector<1x128xf32>
    %44 = vector.broadcast %43 : vector<1x128xf32> to vector<8x128xf32>
    %45 = arith.addf %42, %44 : vector<8x128xf32>
    %46 = arith.truncf %45 : vector<8x128xf32> to vector<8x128xbf16>
    %c0_22 = arith.constant 0 : index
    %c0_23 = arith.constant 0 : index
    %47 = vector.load %arg7[%c0_22, %c0_23] : memref<8x128xbf16, #tpu.memory_space<vmem>>, vector<8x128xbf16>
    tpu.vector_store %arg7[%c0_22, %c0_23], %46 {strides = array<i32>} : memref<8x128xbf16, #tpu.memory_space<vmem>>, vector<8x128xbf16>,
    return
  }
  func.func @transform_0(%arg0: i32) -> (i32, i32) {
    %c0_i32 = arith.constant 0 : i32
    %c0_i32_0 = arith.constant 0 : i32
    return %arg0, %c0_i32 : i32, i32
  }
  func.func @transform_1(%arg0: i32) -> (i32, i32) {
    %c0_i32 = arith.constant 0 : i32
    %c0_i32_0 = arith.constant 0 : i32
    %c0_i32_1 = arith.constant 0 : i32
    return %c0_i32, %c0_i32_0 : i32, i32
  }
  func.func @transform_2(%arg0: i32) -> (i32, i32) {
    %c0_i32 = arith.constant 0 : i32
    %c0_i32_0 = arith.constant 0 : i32
    %c0_i32_1 = arith.constant 0 : i32
    return %c0_i32, %c0_i32_0 : i32, i32
  }
  func.func @transform_3(%arg0: i32) -> (i32, i32) {
    %c0_i32 = arith.constant 0 : i32
    %c0_i32_0 = arith.constant 0 : i32
    %c0_i32_1 = arith.constant 0 : i32
    return %c0_i32, %c0_i32_0 : i32, i32
  }
  func.func @transform_4(%arg0: i32) -> (i32, i32, i32) {
    %c0_i32 = arith.constant 0 : i32
    %c0_i32_0 = arith.constant 0 : i32
    %c0_i32_1 = arith.constant 0 : i32
    %c0_i32_2 = arith.constant 0 : i32
    return %c0_i32, %c0_i32_0, %c0_i32_1 : i32, i32, i32
  }
  func.func @transform_5(%arg0: i32) -> (i32, i32) {
    %c0_i32 = arith.constant 0 : i32
    %c0_i32_0 = arith.constant 0 : i32
    %c0_i32_1 = arith.constant 0 : i32
    return %c0_i32, %c0_i32_0 : i32, i32
  }
  func.func @transform_6(%arg0: i32) -> (i32, i32) {
    %c0_i32 = arith.constant 0 : i32
    %c0_i32_0 = arith.constant 0 : i32
    return %arg0, %c0_i32 : i32, i32
  }
}

</mosaic_0001>

<bundles_post_ra>
// kernel: tpu_custom_call.1
= control target key start
LH: loop header
LB: loop body
LE: loop exit
PB: predicated region body
PF: predicated region fallthrough
CT: control target
= control target key end

     0   :  { %11 = vsyncpa [#allocation3], 0  ;;  %s1719_s0 = inlined_call_operand.hbm [shape: f32[8,259], index: 0, kind: input, shape index: {}]   ;;  %s1720_s1 = inlined_call_operand.hbm [shape: bf16[259,256], index: 1, kind: input, shape index: {}]   ;;  %s1721_s2 = inlined_call_operand.hbm [shape: bf16[256,256], index: 2, kind: input, shape index: {}]   ;;  %s1722_s3 = inlined_call_operand.hbm [shape: bf16[256,128], index: 3, kind: input, shape index: {}]   ;;  %s1723_s4 = inlined_call_operand.hbm [shape: bf16[2,128,128], index: 4, kind: input, shape index: {}]   ;;  %s1724_s5 = inlined_call_operand.vmem [shape: f32[8,256], index: 5, kind: input, shape index: {}]   ;;  %s1725_s6 = inlined_call_operand.hbm [shape: bf16[8,128], index: 6, kind: output, shape index: {}]  }
   0x1   :  { %12 = vsyncpa [#allocation6], 0 }
   0x2   :  { %13 = vsyncpa [#allocation9], 0 }
   0x3   :  { %14 = vsyncpa [#allocation4], 0  ;;  %s1537_s21 = smov [#allocation5]   ;;  %s1397_s25 = scalar_lea.hbm %s1720_s1, 4224 }
   0x4   :  { %s30_s22 = sshll.u32 %s1537_s21, 4  ;;  %p1398_p0 = scmp.ne.s32.totalorder %s1720_s1, %s1397_s25  ;;  %s31_s22 = int_to_ptr.vmem [resolvable:$true] %s30_s22 }
   0x5   :  { %p1401_p1 = scmp.lt.u32.totalorder %s1397_s25, %s1720_s1 }
   0x7   :  { %p1403_p2 = pnand %p1401_p1, %p1398_p0 }
   0x9   :  { %1406 = shalt.err (!%p1403_p2)
}
   0xa   :  { %s1407_s30 = scalar_lea.vmem %s31_s22, 4224  ;;  %p1412_p4 = scmp.lt.s32.totalorder %s31_s22, %s31_s22 }
   0xb   :  { %p1408_p3 = scmp.ne.s32.totalorder %s31_s22, %s1407_s30  ;;  %p1413_p5 = scmp.lt.s32.totalorder %s1407_s30, %s1407_s30 }
   0xd   :  { %p1414_p6 = por %p1413_p5, %p1412_p4 }
   0xf   :  { %p1415_p7 = pnand %p1414_p6, %p1408_p3 }
  0x11   :  { %1418 = shalt.err (!%p1415_p7)
}
  0x12   :  { %s1538_s7 = smov 128   ;;  %s1539_s8 = smov 8  }
  0x13   :  { %36 = dma.hbm_to_vmem [thread:$0]  %s1720_s1, 4224, %s31_s22, [#allocation6], %s1538_s7, %s1538_s7, %s1539_s8  }
  0x14   :  { %s1540_s11 = smov [#allocation8]   ;;  %s1419_s15 = scalar_lea.hbm %s1722_s3, 2048 }
  0x15   :  { %s54_s12 = sshll.u32 %s1540_s11, 4  ;;  %p1420_p8 = scmp.ne.s32.totalorder %s1722_s3, %s1419_s15  ;;  %s55_s12 = int_to_ptr.vmem [resolvable:$true] %s54_s12 }
  0x16   :  { %p1423_p9 = scmp.lt.u32.totalorder %s1419_s15, %s1722_s3 }
  0x18   :  { %p1425_p10 = pnand %p1423_p9, %p1420_p8 }
  0x1a   :  { %1428 = shalt.err (!%p1425_p10)
}
  0x1b   :  { %s1429_s20 = scalar_lea.vmem %s55_s12, 2048  ;;  %p1434_p12 = scmp.lt.s32.totalorder %s55_s12, %s55_s12 }
  0x1c   :  { %p1430_p11 = scmp.ne.s32.totalorder %s55_s12, %s1429_s20  ;;  %p1435_p13 = scmp.lt.s32.totalorder %s1429_s20, %s1429_s20 }
  0x1e   :  { %p1436_p0 = por %p1435_p13, %p1434_p12 }
  0x20   :  { %p1437_p1 = pnand %p1436_p0, %p1430_p11 }
  0x22   :  { %1440 = shalt.err (!%p1437_p1)
}
  0x23   :  { %s1541_s1 = smov 64   ;;  %s1542_s21 = smov 4  }
  0x24   :  { %60 = dma.hbm_to_vmem [thread:$0]  %s1722_s3, 2048, %s55_s12, [#allocation9], %s1541_s1, %s1541_s1, %s1542_s21  }
  0x25   :  { %s1543_s24 = smov [#allocation2]   ;;  %s1544_s26 = smov [#allocation7]  }
  0x26   :  { %s21_s25 = sshll.u32 %s1543_s24, 4  ;;  %s42_s27 = sshll.u32 %s1544_s26, 4  ;;  %s22_s25 = int_to_ptr.vmem [resolvable:$true] %s21_s25  ;;  %s1616_s27 = int_to_ptr.vmem [resolvable:$true] %s42_s27 }
  0x27   :  { %s1441_s30 = scalar_lea.hbm %s1719_s0, 384 }
  0x28   :  { %p1442_p2 = scmp.ne.s32.totalorder %s1719_s0, %s1441_s30  ;;  %p1445_p3 = scmp.lt.u32.totalorder %s1441_s30, %s1719_s0 }
  0x2a   :  { %p1447_p4 = pnand %p1445_p3, %p1442_p2 }
  0x2c   :  { %1450 = shalt.err (!%p1447_p4)
}
  0x2d   :  { %s1451_s3 = scalar_lea.vmem %s22_s25, 384  ;;  %p1456_p6 = scmp.lt.s32.totalorder %s22_s25, %s22_s25 }
  0x2e   :  { %p1452_p5 = scmp.ne.s32.totalorder %s22_s25, %s1451_s3  ;;  %p1457_p7 = scmp.lt.s32.totalorder %s1451_s3, %s1451_s3 }
  0x30   :  { %p1458_p8 = por %p1457_p7, %p1456_p6 }
  0x32   :  { %p1459_p9 = pnand %p1458_p8, %p1452_p5 }
  0x34   :  { %1462 = shalt.err (!%p1459_p9)
}
  0x35   :  { %24 = dma.hbm_to_vmem [thread:$0]  %s1719_s0, 384, %s22_s25, [#allocation3]  }
  0x36   :  { %s1463_s17 = scalar_lea.hbm %s1721_s2, 4096 }
  0x37   :  { %p1464_p10 = scmp.ne.s32.totalorder %s1721_s2, %s1463_s17  ;;  %p1467_p11 = scmp.lt.u32.totalorder %s1463_s17, %s1721_s2 }
  0x39   :  { %p1469_p12 = pnand %p1467_p11, %p1464_p10 }
  0x3b   :  { %1472 = shalt.err (!%p1469_p12)
}
  0x3c   :  { %s1473_s23 = scalar_lea.vmem %s1616_s27, 4096  ;;  %p1478_p0 = scmp.lt.s32.totalorder %s1616_s27, %s1616_s27 }
  0x3d   :  { %p1474_p13 = scmp.ne.s32.totalorder %s1616_s27, %s1473_s23  ;;  %p1479_p1 = scmp.lt.s32.totalorder %s1473_s23, %s1473_s23 }
  0x3f   :  { %p1480_p2 = por %p1479_p1, %p1478_p0 }
  0x41   :  { %p1481_p3 = pnand %p1480_p2, %p1474_p13 }
  0x43   :  { %1484 = shalt.err (!%p1481_p3)
}
  0x44   :  { %48 = dma.hbm_to_vmem [thread:$0]  %s1721_s2, 4096, %s1616_s27, [#allocation6], %s1538_s7, %s1538_s7, %s1539_s8  }
  0x45   :  { %s1545_s25 = smov [#allocation10]   ;;  %s1485_s30 = scalar_lea.hbm %s1723_s4, 2048 }
  0x46   :  { %s66_s26 = sshll.u32 %s1545_s25, 4  ;;  %p1486_p4 = scmp.ne.s32.totalorder %s1723_s4, %s1485_s30  ;;  %s67_s26 = int_to_ptr.vmem [resolvable:$true] %s66_s26 }
  0x47   :  { %p1489_p5 = scmp.lt.u32.totalorder %s1485_s30, %s1723_s4 }
  0x49   :  { %p1491_p6 = pnand %p1489_p5, %p1486_p4 }
  0x4b   :  { %1494 = shalt.err (!%p1491_p6)
}
  0x4c   :  { %s1495_s3 = scalar_lea.vmem %s67_s26, 2048  ;;  %p1500_p8 = scmp.lt.s32.totalorder %s67_s26, %s67_s26 }
  0x4d   :  { %p1496_p7 = scmp.ne.s32.totalorder %s67_s26, %s1495_s3  ;;  %p1501_p9 = scmp.lt.s32.totalorder %s1495_s3, %s1495_s3 }
  0x4f   :  { %p1502_p10 = por %p1501_p9, %p1500_p8 }
  0x51   :  { %p1503_p11 = pnand %p1502_p10, %p1496_p7 }
  0x53   :  { %1506 = shalt.err (!%p1503_p11)
}
  0x54   :  { %72 = dma.hbm_to_vmem [thread:$0]  %s1723_s4, 2048, %s67_s26, [#allocation9], %s1541_s1, %s1541_s1, %s1542_s21  }
  0x55   :  { %1529 = dma.done.wait [#allocation3], 384  }
  0x56   :  { %1530 = vsyncadd [#allocation3], 4294966912 }
  0x57   :  { %1531 = dma.done.wait [#allocation6], 8320  }
  0x58   :  { %1532 = vsyncadd [#allocation6], 4294958976 }
  0x59   :  { %1533 = dma.done.wait [#allocation9], 4096  }
  0x5a   :  { %1534 = vsyncadd [#allocation9], 4294963200  ;;  %v1267_v0 = vld [vmem:[#allocation5 + $0x4] ss:$8 sps:$4 sm:$0xff]   ;;  %v1269_v1 = vld [vmem:[#allocation5] ss:$8 sps:$4 sm:$0xff]  }
  0x5b   :  { %319 = vmatprep.subr.bf16.mxu0 %v1267_v0  ;;  %v1270_v2 = vld [vmem:[#allocation5 + $0x14] ss:$8 sps:$4 sm:$0xff]   ;;  %v1272_v3 = vld [vmem:[#allocation5 + $0x10] ss:$8 sps:$4 sm:$0xff]   ;;  %v1273_v4 = vld [vmem:[#allocation5 + $0x24] ss:$8 sps:$4 sm:$0xff]  }
  0x5c   :  { %320 = vmatpush1.bf16.msra.mxu0 %v1269_v1  ;;  %v1275_v5 = vld [vmem:[#allocation5 + $0x20] ss:$8 sps:$4 sm:$0xff]   ;;  %v1276_v6 = vld [vmem:[#allocation5 + $0x34] ss:$8 sps:$4 sm:$0xff]   ;;  %v1278_v7 = vld [vmem:[#allocation5 + $0x30] ss:$8 sps:$4 sm:$0xff]  }
  0x5d   :  { %321 = vmatprep.subr.bf16.mxu0 %v1270_v2  ;;  %v1279_v8 = vld [vmem:[#allocation5 + $0x44] ss:$8 sps:$4 sm:$0xff]   ;;  %v1281_v9 = vld [vmem:[#allocation5 + $0x40] ss:$8 sps:$4 sm:$0xff]   ;;  %v1282_v10 = vld [vmem:[#allocation5 + $0x54] ss:$8 sps:$4 sm:$0xff]  }
  0x5e   :  { %v1284_v11 = vld [vmem:[#allocation5 + $0x50] ss:$8 sps:$4 sm:$0xff]   ;;  %v1285_v12 = vld [vmem:[#allocation5 + $0x64] ss:$8 sps:$4 sm:$0xff]   ;;  %v1287_v14 = vld [vmem:[#allocation5 + $0x60] ss:$8 sps:$4 sm:$0xff]  }
  0x5f   :  { %v92_v13 = vld [vmem:[#allocation2 + $0x8] sm:$0xff]  ;;  %v1320_v19 = vld [vmem:[#allocation7 + $0x14] ss:$8 sps:$4 sm:$0xff]   ;;  %v1322_v20 = vld [vmem:[#allocation7 + $0x10] ss:$8 sps:$4 sm:$0xff]   ;;  %vm309_vm0 = vcmask 1040384  }
  0x60   :  { %322 = vmatpush1.bf16.msra.mxu0 %v1272_v3  ;;  %v1288_v15 = vld [vmem:[#allocation5 + $0x74] ss:$8 sps:$4 sm:$0xff]   ;;  %v95_v16 = vpack.c.bf16 %v92_v13, %v92_v13  ;;  %v1319_v18 = vld [vmem:[#allocation7] ss:$8 sps:$4 sm:$0xff]   ;;  %v1291_v23 = vld [vmem:[#allocation5 + $0x84] ss:$8 sps:$4 sm:$0xff]  }
  0x61   :  { %323 = vmatprep.subr.bf16.mxu0 %v1273_v4  ;;  %v1317_v17 = vld [vmem:[#allocation7 + $0x4] ss:$8 sps:$4 sm:$0xff]   ;;  %v1290_v21 = vld [vmem:[#allocation5 + $0x70] ss:$8 sps:$4 sm:$0xff]   ;;  %v1293_v25 = vld [vmem:[#allocation5 + $0x80] ss:$8 sps:$4 sm:$0xff]  }
  0x62   :  { %351 = vmatprep.mubr.bf16.mxu0 %v95_v16  ;;  %607 = vmatprep.subr.bf16.mxu1 %v1317_v17  ;;  %v1323_v22 = vld [vmem:[#allocation7 + $0x24] ss:$8 sps:$4 sm:$0xff]   ;;  %v1325_v24 = vld [vmem:[#allocation7 + $0x20] ss:$8 sps:$4 sm:$0xff]   ;;  %v1326_v26 = vld [vmem:[#allocation7 + $0x34] ss:$8 sps:$4 sm:$0xff]   ;;  %v132_v16 = vlaneseq }
  0x63   :  { %608 = vmatpush1.bf16.msra.mxu1 %v1319_v18  ;;  %v1294_v27 = vld [vmem:[#allocation5 + $0x94] ss:$8 sps:$4 sm:$0xff]   ;;  %v1328_v28 = vld [vmem:[#allocation7 + $0x30] ss:$8 sps:$4 sm:$0xff]   ;;  %v1297_v31 = vld [vmem:[#allocation5 + $0xa4] ss:$8 sps:$4 sm:$0xff]  }
  0x64   :  { %324 = vmatpush1.bf16.msra.mxu0 %v1275_v5  ;;  %609 = vmatprep.subr.bf16.mxu1 %v1320_v19  ;;  %v1296_v29 = vld [vmem:[#allocation5 + $0x90] ss:$8 sps:$4 sm:$0xff]   ;;  %v1329_v30 = vld [vmem:[#allocation7 + $0x44] ss:$8 sps:$4 sm:$0xff]   ;;  %v1299_v32 = vld [vmem:[#allocation5 + $0xa0] ss:$8 sps:$4 sm:$0xff]  }
  0x65   :  { %325 = vmatprep.subr.bf16.mxu0 %v1276_v6  ;;  %vm310_vm1 = vcmask 1041408   ;;  %v1331_v33 = vld [vmem:[#allocation7 + $0x40] ss:$8 sps:$4 sm:$0xff]   ;;  %v1300_v34 = vld [vmem:[#allocation5 + $0xb4] ss:$8 sps:$4 sm:$0xff]   ;;  %v1546_v35 = vmov 65535  }
  0x66   :  { %v311_v36 = vsel %vm309_vm0, 4294967295, %v1546_v35  ;;  %v1332_v37 = vld [vmem:[#allocation7 + $0x54] ss:$8 sps:$4 sm:$0xff]   ;;  %v1334_v38 = vld [vmem:[#allocation7 + $0x50] ss:$8 sps:$4 sm:$0xff]   ;;  %v91_v59 = vld [vmem:[#allocation2] sm:$0xff] }
  0x67   :  { %610 = vmatpush1.bf16.msra.mxu1 %v1322_v20  ;;  %v1302_v39 = vld [vmem:[#allocation5 + $0xb0] ss:$8 sps:$4 sm:$0xff]   ;;  %v1335_v40 = vld [vmem:[#allocation7 + $0x64] ss:$8 sps:$4 sm:$0xff]   ;;  %v312_v42 = vsel %vm310_vm1, %v311_v36, 0  ;;  %v94_v0 = vpack.c.bf16 %v91_v59, %v91_v59  ;;  %v1547_v4 = vmov 0  }
  0x68   :  { %326 = vmatpush1.bf16.msra.mxu0 %v1278_v7  ;;  %611 = vmatprep.subr.bf16.mxu1 %v1323_v22  ;;  %v1303_v41 = vld [vmem:[#allocation5 + $0xc4] ss:$8 sps:$4 sm:$0xff]   ;;  %v1337_v43 = vld [vmem:[#allocation7 + $0x60] ss:$8 sps:$4 sm:$0xff]   ;;  %v1306_v46 = vld [vmem:[#allocation5 + $0xd4] ss:$8 sps:$4 sm:$0xff]  }
  0x69   :  { %327 = vmatprep.subr.bf16.mxu0 %v1279_v8  ;;  %v1305_v44 = vld [vmem:[#allocation5 + $0xc0] ss:$8 sps:$4 sm:$0xff]   ;;  %v1338_v45 = vld [vmem:[#allocation7 + $0x74] ss:$8 sps:$4 sm:$0xff]   ;;  %v1308_v48 = vld [vmem:[#allocation5 + $0xd0] ss:$8 sps:$4 sm:$0xff]  }
  0x6a   :  { %v1340_v47 = vld [vmem:[#allocation7 + $0x70] ss:$8 sps:$4 sm:$0xff]   ;;  %v1341_v49 = vld [vmem:[#allocation7 + $0x84] ss:$8 sps:$4 sm:$0xff]   ;;  %v1343_v52 = vld [vmem:[#allocation7 + $0x80] ss:$8 sps:$4 sm:$0xff]  }
  0x6b   :  { %612 = vmatpush1.bf16.msra.mxu1 %v1325_v24  ;;  %v1309_v50 = vld [vmem:[#allocation5 + $0xe4] ss:$8 sps:$4 sm:$0xff]   ;;  %v1311_v53 = vld [vmem:[#allocation5 + $0xe0] ss:$8 sps:$4 sm:$0xff]   ;;  %v1312_v55 = vld [vmem:[#allocation5 + $0xf4] ss:$8 sps:$4 sm:$0xff]  }
  0x6c   :  { %328 = vmatpush1.bf16.msra.mxu0 %v1281_v9  ;;  %613 = vmatprep.subr.bf16.mxu1 %v1326_v26  ;;  %v131_v51 = vld [vmem:[#allocation5 + $0x100] sm:$0x33]  ;;  %v1314_v58 = vld [vmem:[#allocation5 + $0xf0] ss:$8 sps:$4 sm:$0xff]   ;;  %v1347_v60 = vld [vmem:[#allocation7 + $0xa4] ss:$8 sps:$4 sm:$0xff]  }
  0x6d   :  { %329 = vmatprep.subr.bf16.mxu0 %v1282_v10  ;;  %v1344_v54 = vld [vmem:[#allocation7 + $0x94] ss:$8 sps:$4 sm:$0xff]   ;;  %v1101_v56 = vcombine.high %v131_v51, %v131_v51  ;;  %v1346_v57 = vld [vmem:[#allocation7 + $0x90] ss:$8 sps:$4 sm:$0xff]   ;;  %v1100_v61 = vcombine.low %v131_v51, %v131_v51  ;;  %v1349_v63 = vld [vmem:[#allocation7 + $0xa0] ss:$8 sps:$4 sm:$0xff]  }
  0x6e   :  { %v1350_v2 = vld [vmem:[#allocation7 + $0xb4] ss:$8 sps:$4 sm:$0xff]   ;;  %v1352_v3 = vld [vmem:[#allocation7 + $0xb0] ss:$8 sps:$4 sm:$0xff]   ;;  %v1353_v5 = vld [vmem:[#allocation7 + $0xc4] ss:$8 sps:$4 sm:$0xff]  }
  0x6f   :  { %614 = vmatpush1.bf16.msra.mxu1 %v1328_v28  ;;  %v317_v62 = vand.u32 %v1101_v56, %v312_v42  ;;  %v314_v1 = vand.u32 %v1100_v61, %v312_v42  ;;  %v1355_v6 = vld [vmem:[#allocation7 + $0xc0] ss:$8 sps:$4 sm:$0xff]   ;;  %v93_v7 = vld [vmem:[#allocation2 + $0x10] sm:$0xff]  ;;  %vm305_vm2 = vcmask 23552   ;;  %v1665_v17 = vshrl.u32 %v132_v16, 7 }
  0x70   :  { %330 = vmatpush1.bf16.msra.mxu0 %v1284_v11  ;;  %615 = vmatprep.subr.bf16.mxu1 %v1329_v30  ;;  %v1356_v8 = vld [vmem:[#allocation7 + $0xd4] ss:$8 sps:$4 sm:$0xff]   ;;  %v96_v9 = vpack.c.bf16 %v93_v7, %v93_v7  ;;  %v1358_v10 = vld [vmem:[#allocation7 + $0xd0] ss:$8 sps:$4 sm:$0xff]   ;;  %v1359_v11 = vld [vmem:[#allocation7 + $0xe4] ss:$8 sps:$4 sm:$0xff]  }
  0x71   :  { %331 = vmatprep.subr.bf16.mxu0 %v1285_v12  ;;  %v1361_v12 = vld [vmem:[#allocation7 + $0xe0] ss:$8 sps:$4 sm:$0xff]   ;;  %v1362_v13 = vld [vmem:[#allocation7 + $0xf4] ss:$8 sps:$4 sm:$0xff]   ;;  %v134_v18 = vsub.s32 0, %v1665_v17  ;;  %v1548_v51 = vmov 0.0  }
  0x72   :  { %v1671_v19 = vld [vmem:[%s1724_s5] sm:$0xff]  ;;  %v1676_v20 = vld [vmem:[%s1724_s5 + $0x8] sm:$0xff]  ;;  %v441_v56 = vsub.s32 1, %v1665_v17  ;;  %vm1549_vm3 = vmmov 0   ;;  %v688_v16 = vsub.s32 2, %v1665_v17  ;;  %s1550_s5 = smov [#allocation11]  }
  0x73   :  { %616 = vmatpush1.bf16.msra.mxu1 %v1331_v33  ;;  %v139_v22 = vrot.slane %v1676_v20, %v134_v18  ;;  %v1367_v36 = vld [vmem:[#allocation8 + $0x48] sm:$0xff]   ;;  %v1373_v42 = vld [vmem:[#allocation8 + $0x60] sm:$0xff]   ;;  %s1057_s27 = sshll.u32 %s1550_s5, 4  ;;  %s1058_s27 = int_to_ptr.vmem [resolvable:$true] %s1057_s27 }
  0x74   :  { %332 = vmatpush1.bf16.msra.mxu0 %v1287_v14  ;;  %617 = vmatprep.subr.bf16.mxu1 %v1332_v37  ;;  %v1364_v14 = vld [vmem:[#allocation7 + $0xf0] ss:$8 sps:$4 sm:$0xff]   ;;  %v1368_v37 = vld [vmem:[#allocation8 + $0x8] sm:$0xff]   ;;  %s1507_s12 = scalar_lea.vmem %s1058_s27, 64  ;;  %p1512_p13 = scmp.lt.s32.totalorder %s1058_s27, %s1058_s27 }
  0x75   :  { %333 = vmatprep.subr.bf16.mxu0 %v1288_v15  ;;  %v1365_v15 = vld [vmem:[#allocation8 + $0x40] sm:$0xff]   ;;  %v1386_v7 = vld [vmem:[#allocation10 + $0x28] sm:$0xff]   ;;  %p1508_p12 = scmp.ne.s32.totalorder %s1058_s27, %s1507_s12  ;;  %p1513_p0 = scmp.lt.s32.totalorder %s1507_s12, %s1507_s12 }
  0x77   :  { %618 = vmatpush1.bf16.msra.mxu1 %v1334_v38  ;;  %v1369_v38 = vld [vmem:[#allocation8 + $0x50] sm:$0xff]   ;;  %p1514_p1 = por %p1513_p0, %p1512_p13 }
  0x78   :  { %334 = vmatpush1.bf16.msra.mxu0 %v1290_v21  ;;  %619 = vmatprep.subr.bf16.mxu1 %v1335_v40  ;;  %v135_v21 = vrot.slane %v1671_v19, %v134_v18  ;;  %v1371_v40 = vld [vmem:[#allocation8 + $0x58] sm:$0xff]  }
  0x79   :  { %335 = vmatprep.subr.bf16.mxu0 %v1291_v23  ;;  %p1515_p2 = pnand %p1514_p1, %p1508_p12 }
  0x7b   :  { %620 = vmatpush1.bf16.msra.mxu1 %v1337_v43  ;;  %v1374_v43 = vld [vmem:[#allocation8 + $0x20] sm:$0xff]  }
  0x7c   :  { %336 = vmatpush1.bf16.msra.mxu0 %v1293_v25  ;;  %621 = vmatprep.subr.bf16.mxu1 %v1338_v45  ;;  %v1376_v45 = vld [vmem:[#allocation8 + $0x28] sm:$0xff]  }
  0x7d   :  { %337 = vmatprep.subr.bf16.mxu0 %v1294_v27 }
  0x7f   :  { %622 = vmatpush1.bf16.msra.mxu1 %v1340_v47  ;;  %v1378_v47 = vld [vmem:[#allocation8 + $0x30] sm:$0xff]  }
  0x80   :  { %338 = vmatpush1.bf16.msra.mxu0 %v1296_v29  ;;  %623 = vmatprep.subr.bf16.mxu1 %v1341_v49  ;;  %v1380_v49 = vld [vmem:[#allocation8 + $0x38] sm:$0xff]  }
  0x81   :  { %339 = vmatprep.subr.bf16.mxu0 %v1297_v31 }
  0x83   :  { %624 = vmatpush1.bf16.msra.mxu1 %v1343_v52  ;;  %v1382_v52 = vld [vmem:[#allocation10 + $0x8] sm:$0xff]  }
  0x84   :  { %340 = vmatpush1.bf16.msra.mxu0 %v1299_v32  ;;  %625 = vmatprep.subr.bf16.mxu1 %v1344_v54  ;;  %v1384_v54 = vld [vmem:[#allocation10 + $0x18] sm:$0xff]  }
  0x85   :  { %341 = vmatprep.subr.bf16.mxu0 %v1300_v34  ;;  %v1366_v34 = vld [vmem:[#allocation8] sm:$0xff]  }
  0x87   :  { %626 = vmatpush1.bf16.msra.mxu1 %v1346_v57  ;;  %v442_v57 = vrot.slane %v1671_v19, %v441_v56 }
  0x88   :  { %342 = vmatpush1.bf16.msra.mxu0 %v1302_v39  ;;  %627 = vmatprep.subr.bf16.mxu1 %v1347_v60  ;;  %v1370_v39 = vld [vmem:[#allocation8 + $0x10] sm:$0xff]  }
  0x89   :  { %343 = vmatprep.subr.bf16.mxu0 %v1303_v41  ;;  %v1372_v41 = vld [vmem:[#allocation8 + $0x18] sm:$0xff]  }
  0x8b   :  { %628 = vmatpush1.bf16.msra.mxu1 %v1349_v63 }
  0x8c   :  { %344 = vmatpush1.bf16.msra.mxu0 %v1305_v44  ;;  %629 = vmatprep.subr.bf16.mxu1 %v1350_v2  ;;  %v1375_v44 = vld [vmem:[#allocation8 + $0x68] sm:$0xff]  }
  0x8d   :  { %345 = vmatprep.subr.bf16.mxu0 %v1306_v46  ;;  %v1377_v46 = vld [vmem:[#allocation8 + $0x70] sm:$0xff]  }
  0x8f   :  { %630 = vmatpush1.bf16.msra.mxu1 %v1352_v3 }
  0x90   :  { %346 = vmatpush1.bf16.msra.mxu0 %v1308_v48  ;;  %631 = vmatprep.subr.bf16.mxu1 %v1353_v5  ;;  %v1379_v48 = vld [vmem:[#allocation8 + $0x78] sm:$0xff]  }
  0x91   :  { %347 = vmatprep.subr.bf16.mxu0 %v1309_v50  ;;  %v1381_v50 = vld [vmem:[#allocation10] sm:$0xff]  }
  0x93   :  { %632 = vmatpush1.bf16.msra.mxu1 %v1355_v6 }
  0x94   :  { %348 = vmatpush1.bf16.msra.mxu0 %v1311_v53  ;;  %633 = vmatprep.subr.bf16.mxu1 %v1356_v8  ;;  %v1383_v53 = vld [vmem:[#allocation10 + $0x10] sm:$0xff]  }
  0x95   :  { %349 = vmatprep.subr.bf16.mxu0 %v1312_v55  ;;  %v1385_v55 = vld [vmem:[#allocation10 + $0x20] sm:$0xff]   ;;  %v1387_v8 = vld [vmem:[#allocation10 + $0x30] sm:$0xff]  }
  0x97   :  { %634 = vmatpush1.bf16.msra.mxu1 %v1358_v10  ;;  %v1389_v10 = vld [vmem:[#allocation10 + $0x40] sm:$0xff]  }
  0x98   :  { %350 = vmatpush1.bf16.msra.mxu0 %v1314_v58  ;;  %635 = vmatprep.subr.bf16.mxu1 %v1359_v11  ;;  %v446_v58 = vrot.slane %v1676_v20, %v441_v56  ;;  %v1390_v11 = vld [vmem:[#allocation10 + $0x48] sm:$0xff]   ;;  %v689_v20 = vrot.slane %v1671_v19, %v688_v16 }
  0x99   :  { %360 = vmatprep.subr.bf16.mxu0 %v317_v62 }
  0x9b   :  { %352 = vmatmul.mubr.bf16.vlgmr.msra.gmra.mrb[0].mxu0 %v94_v0  ;;  %636 = vmatpush1.bf16.msra.mxu1 %v1361_v12  ;;  %v1391_v12 = vld [vmem:[#allocation10 + $0x50] sm:$0xff]  }
  0x9c   :  { %361 = vmatpush1.bf16.msra.mxu0 %v314_v1  ;;  %392 = vmatprep.mubr.bf16.mxu0 %v1547_v4 }
  0x9d   :  { %637 = vmatprep.subr.bf16.mxu1 %v1362_v13  ;;  %1207 = vmatprep.subr.bf16.mxu0 %v1548_v51  ;;  %v1392_v13 = vld [vmem:[#allocation10 + $0x58] sm:$0xff]  }
  0x9f   :  { %638 = vmatpush1.bf16.msra.mxu1 %v1364_v14  ;;  %v1393_v14 = vld [vmem:[#allocation10 + $0x60] sm:$0xff]  }
  0xa0   :  { %1167 = vmatprep.subr.bf16.mxu1 %v1365_v15  ;;  %v1394_v15 = vld [vmem:[#allocation10 + $0x68] sm:$0xff]  }
  0xa7   :  { %1102 = vmatmul.mubr.msk.bf16.vlgmr.msra.gmra.mrb[0].mxu0 %vm305_vm2, %v96_v9  ;;  %v1388_v9 = vld [vmem:[#allocation10 + $0x38] sm:$0xff]  }
  0xa8   :  { %1208 = vmatpush3.bf16.msra.mxu0 %v1381_v50  ;;  %1223 = vmatprep.mubr.msk.bf16.mxu0 %vm1549_vm3, %v1548_v51 }
  0xa9   :  { %1209 = vmatprep.subr.bf16.mxu0 %v1548_v51 }
  0xac   :  { %1210 = vmatpush3.bf16.msra.mxu0 %v1382_v52 }
  0xad   :  { %1211 = vmatprep.subr.bf16.mxu0 %v1548_v51 }
  0xb0   :  { %1212 = vmatpush3.bf16.msra.mxu0 %v1383_v53 }
  0xb1   :  { %1213 = vmatprep.subr.bf16.mxu0 %v1548_v51 }
  0xb4   :  { %1214 = vmatpush3.bf16.msra.mxu0 %v1384_v54 }
  0xb5   :  { %1215 = vmatprep.subr.bf16.mxu0 %v1548_v51 }
  0xb8   :  { %1216 = vmatpush3.bf16.msra.mxu0 %v1385_v55 }
  0xb9   :  { %1217 = vmatprep.subr.bf16.mxu0 %v1548_v51 }
  0xbc   :  { %1218 = vmatpush3.bf16.msra.mxu0 %v1386_v7 }
  0xbd   :  { %1219 = vmatprep.subr.bf16.mxu0 %v1548_v51 }
  0xc0   :  { %1220 = vmatpush3.bf16.msra.mxu0 %v1387_v8 }
  0xc1   :  { %1221 = vmatprep.subr.bf16.mxu0 %v1548_v51 }
  0xc4   :  { %1222 = vmatpush3.bf16.msra.mxu0 %v1388_v9 }
 0x17a   :  { %v394_v23 = vpop.f32.mrb[0].mxu0 }
 0x17b   :  { %v1247_v24 = vadd.f32 %v394_v23, %v135_v21  ;;  %v396_v25 = vpop.f32.mrb[1].mxu0 }
 0x17c   :  { %v1248_v26 = vadd.f32 %v396_v25, %v139_v22  ;;  %v398_v27 = vpop.f32.mrb[2].mxu0 }
 0x17d   :  { %v401_v28 = vmul.f32 0.01, %v1247_v24  ;;  %v399_v29 = vpop.f32.mrb[3].mxu0 }
 0x17e   :  { %v402_v30 = vmul.f32 0.01, %v1248_v26  ;;  %v1395_v29 = vld [vmem:[#allocation10 + $0x70] sm:$0xff]  }
 0x17f   :  { %v403_v31 = vmax.f32 %v1247_v24, %v401_v28 }
 0x180   :  { %v404_v32 = vmax.f32 %v1248_v26, %v402_v30  ;;  %v1396_v30 = vld [vmem:[#allocation10 + $0x78] sm:$0xff]  }
 0x181   :  { %v405_v35 = vpack.c.bf16 %v403_v31, %v403_v31  ;;  %v847_v31 = vsub.s32 3, %v1665_v17 }
 0x182   :  { %v406_v33 = vpack.c.bf16 %v404_v32, %v404_v32 }
 0x183   :  { %v848_v32 = vrot.slane %v1671_v19, %v847_v31 }
 0x184   :  { %639 = vmatprep.mubr.bf16.mxu1 %v406_v33 }
 0x185   :  { %640 = vmatmul.mubr.bf16.vlgmr.msra.gmra.mrb[0].mxu1 %v405_v35 }
 0x186   :  { %1168 = vmatpush3.bf16.msra.mxu1 %v1366_v34 }
 0x187   :  { %1169 = vmatprep.subr.bf16.mxu1 %v1367_v36 }
 0x18a   :  { %1170 = vmatpush3.bf16.msra.mxu1 %v1368_v37 }
 0x18b   :  { %1171 = vmatprep.subr.bf16.mxu1 %v1369_v38 }
 0x18e   :  { %1172 = vmatpush3.bf16.msra.mxu1 %v1370_v39 }
 0x18f   :  { %1173 = vmatprep.subr.bf16.mxu1 %v1371_v40 }
 0x192   :  { %1174 = vmatpush3.bf16.msra.mxu1 %v1372_v41  ;;  %v959_v41 = vsub.s32 4, %v1665_v17 }
 0x193   :  { %1175 = vmatprep.subr.bf16.mxu1 %v1373_v42 }
 0x194   :  { %v960_v42 = vrot.slane %v1671_v19, %v959_v41 }
 0x196   :  { %1176 = vmatpush3.bf16.msra.mxu1 %v1374_v43 }
 0x197   :  { %1177 = vmatprep.subr.bf16.mxu1 %v1375_v44 }
 0x19a   :  { %1178 = vmatpush3.bf16.msra.mxu1 %v1376_v45 }
 0x19b   :  { %1179 = vmatprep.subr.bf16.mxu1 %v1377_v46 }
 0x19e   :  { %1180 = vmatpush3.bf16.msra.mxu1 %v1378_v47 }
 0x19f   :  { %1181 = vmatprep.subr.bf16.mxu1 %v1379_v48 }
 0x1a2   :  { %1182 = vmatpush3.bf16.msra.mxu1 %v1380_v49 }
 0x1a3   :  { %1227 = vmatprep.subr.bf16.mxu1 %v1548_v51 }
 0x258   :  { %v641_v59 = vpop.f32.mrb[0].mxu1 }
 0x259   :  { %v642_v60 = vadd.f32 %v641_v59, %v442_v57  ;;  %v643_v61 = vpop.f32.mrb[1].mxu1 }
 0x25a   :  { %v644_v62 = vadd.f32 %v643_v61, %v446_v58  ;;  %v645_v63 = vpop.f32.mrb[2].mxu1 }
 0x25b   :  { %v648_v0 = vmul.f32 0.01, %v642_v60  ;;  %v646_v1 = vpop.f32.mrb[3].mxu1 }
 0x25c   :  { %v649_v2 = vmul.f32 0.01, %v644_v62 }
 0x25d   :  { %v650_v3 = vmax.f32 %v642_v60, %v648_v0 }
 0x25e   :  { %v651_v4 = vmax.f32 %v644_v62, %v649_v2 }
 0x25f   :  { %v652_v6 = vpack.c.bf16 %v650_v3, %v650_v3 }
 0x260   :  { %v653_v5 = vpack.c.bf16 %v651_v4, %v651_v4 }
 0x262   :  { %818 = vmatprep.mubr.bf16.mxu1 %v653_v5 }
 0x263   :  { %819 = vmatmul.mubr.bf16.vlgmr.msra.gmra.mrb[4].mxu1 %v652_v6 }
 0x264   :  { %1243 = vmatprep.mubr.msk.bf16.mxu1 %vm1549_vm3, %v1548_v51  ;;  %1228 = vmatpush3.bf16.msra.mxu1 %v1389_v10 }
 0x265   :  { %1229 = vmatprep.subr.bf16.mxu1 %v1548_v51 }
 0x268   :  { %1230 = vmatpush3.bf16.msra.mxu1 %v1390_v11 }
 0x269   :  { %1231 = vmatprep.subr.bf16.mxu1 %v1548_v51 }
 0x26c   :  { %1232 = vmatpush3.bf16.msra.mxu1 %v1391_v12 }
 0x26d   :  { %1233 = vmatprep.subr.bf16.mxu1 %v1548_v51 }
 0x270   :  { %1234 = vmatpush3.bf16.msra.mxu1 %v1392_v13 }
 0x271   :  { %1235 = vmatprep.subr.bf16.mxu1 %v1548_v51 }
 0x274   :  { %1236 = vmatpush3.bf16.msra.mxu1 %v1393_v14 }
 0x275   :  { %1237 = vmatprep.subr.bf16.mxu1 %v1548_v51 }
 0x278   :  { %1238 = vmatpush3.bf16.msra.mxu1 %v1394_v15 }
 0x279   :  { %1239 = vmatprep.subr.bf16.mxu1 %v1548_v51 }
 0x27c   :  { %1240 = vmatpush3.bf16.msra.mxu1 %v1395_v29 }
 0x27d   :  { %1241 = vmatprep.subr.bf16.mxu1 %v1548_v51 }
 0x280   :  { %1242 = vmatpush3.bf16.msra.mxu1 %v1396_v30 }
 0x336   :  { %v1183_v18 = vpop.f32.mrb[4].mxu1 }
 0x337   :  { %v1184_v21 = vpop.f32.mrb[5].mxu1 }
 0x338   :  { %v1185_v22 = vadd.f32 %v1184_v21, %v1183_v18  ;;  %v1186_v23 = vpop.f32.mrb[6].mxu1 }
 0x339   :  { %v1187_v24 = vpop.f32.mrb[7].mxu1 }
 0x33a   :  { %v821_v25 = vadd.f32 %v1185_v22, %v689_v20 }
 0x33c   :  { %v826_v26 = vmul.f32 0.01, %v821_v25 }
 0x33e   :  { %v827_v27 = vmax.f32 %v821_v25, %v826_v26 }
 0x340   :  { %v828_v28 = vpack.c.bf16 %v827_v27, %v827_v27 }
 0x342   :  { %1224 = vmatmul.mubr.bf16.vlgmr.msra.gmra.mrb[4].mxu0 %v828_v28 }
 0x415   :  { %v931_v33 = vpop.f32.mrb[4].mxu0 }
 0x416   :  { %v932_v34 = vadd.f32 %v931_v33, %v848_v32  ;;  %v1225_v35 = vpop.f32.mrb[5].mxu0 }
 0x417   :  { %v934_v36 = vpop.f32.mrb[6].mxu0 }
 0x418   :  { %v937_v37 = vmul.f32 0.01, %v932_v34  ;;  %v1226_v38 = vpop.f32.mrb[7].mxu0 }
 0x41a   :  { %v938_v39 = vmax.f32 %v932_v34, %v937_v37 }
 0x41c   :  { %v939_v40 = vpack.c.bf16 %v938_v39, %v938_v39 }
 0x41e   :  { %1244 = vmatmul.mubr.bf16.vlgmr.msra.gmra.mrb[8].mxu1 %v939_v40 }
 0x4f1   :  { %v1043_v43 = vpop.f32.mrb[8].mxu1 }
 0x4f2   :  { %v1044_v44 = vadd.f32 %v1043_v43, %v960_v42  ;;  %v1245_v45 = vpop.f32.mrb[9].mxu1 }
 0x4f3   :  { %v1046_v46 = vpop.f32.mrb[10].mxu1 }
 0x4f4   :  { %v1049_v47 = vpack.c.bf16 %v1044_v44, %v1044_v44  ;;  %v1246_v48 = vpop.f32.mrb[11].mxu1 }
 0x4f6   :  { %1050 = vst [vmem:[#allocation11] sm:$0xf] %v1049_v47 }
 0x4f7   :  { %1518 = shalt.err (!%p1515_p2)
}
 0x4f8   :  { %s1519_s16 = scalar_lea.hbm %s1725_s6, 64 }
 0x4f9   :  { %p1520_p3 = scmp.ne.s32.totalorder %s1725_s6, %s1519_s16  ;;  %p1523_p4 = scmp.lt.u32.totalorder %s1519_s16, %s1725_s6 }
 0x4fb   :  { %p1525_p5 = pnand %p1523_p4, %p1520_p3 }
 0x4fd   :  { %1528 = shalt.err (!%p1525_p5)
}
 0x4fe   :  { %1060 = dma.vmem_to_hbm [thread:$0]  %s1058_s27, 64, %s1725_s6, [#allocation4]  }
 0x4ff   :  { %1535 = dma.done.wait [#allocation4], 64  }
 0x500   :  { %1536 = vsyncadd [#allocation4], 4294967232 }
 0x501   :  { %1064 = vsyncpa [#allocation3], 1 }
 0x502   :  { %1065 = vsyncpa [#allocation6], 1 }
 0x503   :  { %1066 = vsyncpa [#allocation9], 1 }
 0x504   :  { %1067 = vsyncpa [#allocation4], 1 }

</bundles_post_ra>
